<compile_context>
chip_gen: v6e
topology: v6e:2x2x1
jax: 0.10.0
libtpu: 0.0.40
codegen_flags: <defaults>
</compile_context>

<pallas_src>
import jax
import jax.numpy as jnp
from jax.experimental import pallas as pl
from jax.experimental.pallas import tpu as pltpu


def _round_up(x, m):
    return ((x + m - 1) // m) * m


def _cdiv(a, b):
    return (a + b - 1) // b


def actor_kernel(feat_ref, w_ref, b_ref, adim_ref, out_ref):
    """Fused linear -> action-dim mask -> softmax for one batch tile.

    feat_ref : [TB, H]   bf16  (preprocess output tile)
    w_ref    : [H, Ap]   bf16  (pre-transposed, zero-padded nn.Linear weight)
    b_ref    : [1, Ap]   f32   (zero-padded nn.Linear bias)
    adim_ref : [TB, 1]   i32   (obs['action_dim'])
    out_ref  : [TB, Ap]  bf16  (softmax probabilities, lane-dense)
    """
    # MXU matmul, bf16 inputs, f32 accumulate. No in-kernel transpose (weight is [H, Ap]).
    logits = jnp.dot(feat_ref[...], w_ref[...],
                     preferred_element_type=jnp.float32) + b_ref[...]

    TB, Ap = out_ref.shape
    col = jax.lax.broadcasted_iota(jnp.int32, (TB, Ap), 1)
    mask = col >= adim_ref[...]                       # [TB, Ap] via [TB, 1] broadcast

    # Numerically stable softmax. Masking AFTER exp (where(mask, 0, e)) gives the same
    # probabilities as masked_fill_(-inf) -- masked entries are exactly 0 -- while keeping
    # inf out of the max/exp path. (action_dim == 0 would still be NaN, same as PyTorch.)
    m = jnp.max(logits, axis=-1, keepdims=True)
    e = jnp.exp(logits - m)
    e = jnp.where(mask, 0.0, e)
    s = jnp.sum(e, axis=-1, keepdims=True)
    inv = 1.0 / s                                     # exact; only a [TB, 1] column
    out_ref[...] = (e * inv).astype(out_ref.dtype)


def prepare_actor_params(weight, bias):
    """One-time parameter prep, hoisted out of the per-call path.

    weight: [A, H] f32 (PyTorch nn.Linear layout), bias: [A] f32.
    Returns (w_t [H, A_pad] bf16, b_p [1, A_pad] f32, A).
    """
    A, H = weight.shape
    A_pad = _round_up(A, 128)                         # lane-dense output stores
    w_t = jnp.zeros((H, A_pad), jnp.bfloat16).at[:, :A].set(
        weight.T.astype(jnp.bfloat16))
    b_p = jnp.zeros((1, A_pad), jnp.float32).at[0, :A].set(bias.astype(jnp.float32))
    return w_t, b_p, A


def _choose_tile_b(B, tile_b, min_split=512):
    """Pick a batch tile: one tile for small B, >= 2 balanced tiles for large B."""
    if B < min_split:
        # Single tile; 16 rows = native bf16 sublane-packed tile height.
        return _round_up(B, 16)
    # At least 2 tiles (keeps both v7x TensorCores busy), at most ceil(B / tile_b)
    # tiles; balance so at most one tile is partially used (caps dead-row waste).
    n_tiles = max(2, _cdiv(B, tile_b))
    return _round_up(_cdiv(B, n_tiles), 16)


def actor_forward(feat, w_t, b_p, action_dim, action_space_n, *,
                  tile_b=2048, out_dtype=jnp.bfloat16):
    """feat: [B, H], prepared (w_t, b_p) from prepare_actor_params, action_dim: [B] i32.

    Returns softmax probabilities of shape [B, action_space_n] in `out_dtype`
    (bf16 by default; documented precision deviation from the f32 PyTorch reference).
    """
    B, H = feat.shape
    A_pad = w_t.shape[1]
    A = action_space_n

    TILE_B = _choose_tile_b(B, tile_b)
    B_pad = _round_up(B, TILE_B)

    feat_bf = feat.astype(jnp.bfloat16)
    adim = action_dim.astype(jnp.int32)[:, None]
    if B_pad != B:
        feat_bf = jnp.pad(feat_bf, ((0, B_pad - B), (0, 0)))
        # Padded rows get action_dim = A_pad (nothing masked) so their rows stay finite;
        # they are sliced away below.
        adim = jnp.pad(adim, ((0, B_pad - B), (0, 0)), constant_values=A_pad)

    grid = (B_pad // TILE_B,)

    cost = pl.CostEstimate(
        flops=2 * B_pad * H * A_pad,
        transcendentals=B_pad * A_pad,                # exp
        bytes_accessed=(feat_bf.size * 2 + w_t.size * 2 + b_p.size * 4
                        + adim.size * 4
                        + B_pad * A_pad * jnp.dtype(out_dtype).itemsize),
    )

    out = pl.pallas_call(
        actor_kernel,
        out_shape=jax.ShapeDtypeStruct((B_pad, A_pad), out_dtype),
        grid=grid,
        in_specs=[
            pl.BlockSpec((TILE_B, H), lambda i: (i, 0)),       # feat: tiled over batch
            pl.BlockSpec((H, A_pad), lambda i: (0, 0)),        # weight: grid-invariant
            pl.BlockSpec((1, A_pad), lambda i: (0, 0)),        # bias: grid-invariant
            pl.BlockSpec((TILE_B, 1), lambda i: (i, 0)),       # action_dim: tiled over batch
        ],
        out_specs=pl.BlockSpec((TILE_B, A_pad), lambda i: (i, 0)),
        compiler_params=pltpu.CompilerParams(
            dimension_semantics=("parallel",),                 # 2-TC batch split on v7x
            vmem_limit_bytes=32 * 1024 * 1024,                 # TILE_B=2048 uses ~2.6 MB
        ),
        cost_estimate=cost,
    )(feat_bf, w_t, b_p, adim)

    return out[:B, :A]


def preprocess_stub(action_history, embedding):
    """Plain-JAX stand-in for Actor's injected `preprocess` module.

    action_history: [B, T] int32 token ids; embedding: [V, H] f32.
    Returns [B, H] features (mean-pooled embeddings)."""
    emb = jnp.take(embedding, action_history, axis=0)          # [B, T, H]
    return jnp.mean(emb, axis=1)                               # [B, H]


if __name__ == "__main__":
    key = jax.random.PRNGKey(0)
    k_emb, k_w, k_b, k_hist = jax.random.split(key, 4)

    # Small shapes consistent with the module.
    B, T, H, A = 4, 8, 32, 8          # batch, seq len, hidden_dim, action_space.n
    V = A + 1                         # embedding vocab (action ids + SOS)

    # Deterministic synthetic parameters.
    embedding = jax.random.normal(k_emb, (V, H), dtype=jnp.float32) * 0.1
    lin_w = jax.random.normal(k_w, (A, H), dtype=jnp.float32) * (1.0 / jnp.sqrt(H))
    lin_b = jax.random.normal(k_b, (A,), dtype=jnp.float32) * 0.01

    # Synthetic observation.
    action_history = jax.random.randint(k_hist, (B, T), 0, V).astype(jnp.int32)
    obs_action_dim = jnp.array([5, 8, 3, 8], dtype=jnp.int32)   # per-sample valid actions

    # One-time parameter prep (hoisted out of the forward path).
    w_t, b_p, _ = prepare_actor_params(lin_w, lin_b)

    # Glue: preprocess (external module) in plain JAX.
    feat = preprocess_stub(action_history, embedding)           # [B, H]

    # Pallas kernel: linear + mask + softmax.
    probs = actor_forward(feat, w_t, b_p, obs_action_dim, A)
    probs = jax.block_until_ready(probs)
    probs_f32 = probs.astype(jnp.float32)

    # Reference check (plain JAX, f32).
    logits_ref = feat @ lin_w.T + lin_b
    mask_ref = jnp.arange(A)[None, :] >= obs_action_dim[:, None]
    logits_ref = jnp.where(mask_ref, -jnp.inf, logits_ref)
    probs_ref = jax.nn.softmax(logits_ref, axis=-1)

    assert probs.shape == (B, A)
    # bf16 matmul inputs + bf16 output store -> modest tolerance vs the f32 reference.
    assert jnp.allclose(probs_f32, probs_ref, atol=2e-2), "mismatch vs reference"
    # masked positions must be exactly zero probability
    assert bool(jnp.all(jnp.where(mask_ref, probs_f32, 0.0) == 0.0))
    # rows must still sum to ~1 (bf16 rounding of the stored probs)
    assert bool(jnp.all(jnp.abs(jnp.sum(probs_f32, axis=-1) - 1.0) < 1e-2))

    print("KERNEL_OK")
</pallas_src>

<mosaic_0001>
module attributes {stable_mosaic.version = 11 : i64} {
  func.func @actor_kernel(%arg0: i32, %arg1: memref<16x32xbf16, #tpu.memory_space<vmem>>, %arg2: memref<32x128xbf16, #tpu.memory_space<vmem>>, %arg3: memref<1x128xf32, #tpu.memory_space<vmem>>, %arg4: memref<16x1xi32, #tpu.memory_space<vmem>>, %arg5: memref<16x128xbf16, #tpu.memory_space<vmem>>) attributes {dimension_semantics = [#tpu.dimension_semantics<parallel>], iteration_bounds = array<i64: 1>, scalar_prefetch = 0 : i64, scratch_operands = 0 : i64, tpu.core_type = #tpu.core_type<tc>, window_params = [{transform_indices = @transform_0, window_bounds = array<i64: 16, 32>}, {pipeline_mode = #tpu.pipeline_mode<synchronous>, transform_indices = @transform_1, window_bounds = array<i64: 32, 128>}, {pipeline_mode = #tpu.pipeline_mode<synchronous>, transform_indices = @transform_2, window_bounds = array<i64: 1, 128>}, {transform_indices = @transform_3, window_bounds = array<i64: 16, 1>}, {transform_indices = @transform_4, window_bounds = array<i64: 16, 128>}]} {
    %c0 = arith.constant 0 : index
    %c0_0 = arith.constant 0 : index
    %0 = vector.load %arg1[%c0, %c0_0] : memref<16x32xbf16, #tpu.memory_space<vmem>>, vector<16x32xbf16>
    %c0_1 = arith.constant 0 : index
    %c0_2 = arith.constant 0 : index
    %1 = vector.load %arg2[%c0_1, %c0_2] : memref<32x128xbf16, #tpu.memory_space<vmem>>, vector<32x128xbf16>
    %cst = arith.constant dense<0.000000e+00> : vector<16x128xf32>
    %2 = tpu.matmul %0, %1, %cst {dimension_numbers = #tpu.dot_dimension_numbers<[1], [0], [0], [1], [0, 0, 1, 1], [], []>} : vector<16x32xbf16>, vector<32x128xbf16>, vector<16x128xf32> -> vector<16x128xf32>
    %c0_3 = arith.constant 0 : index
    %c0_4 = arith.constant 0 : index
    %3 = vector.load %arg3[%c0_3, %c0_4] : memref<1x128xf32, #tpu.memory_space<vmem>>, vector<1x128xf32>
    %4 = vector.broadcast %3 : vector<1x128xf32> to vector<16x128xf32>
    %5 = arith.addf %2, %4 : vector<16x128xf32>
    %6 = tpu.iota {dimensions = array<i32: 1>} : vector<16x128xi32>
    %c0_5 = arith.constant 0 : index
    %c0_6 = arith.constant 0 : index
    %7 = vector.load %arg4[%c0_5, %c0_6] : memref<16x1xi32, #tpu.memory_space<vmem>>, vector<16x1xi32>
    %8 = vector.broadcast %7 : vector<16x1xi32> to vector<16x128xi32>
    %9 = arith.cmpi sge, %6, %8 : vector<16x128xi32>
    %cst_7 = arith.constant dense<0xFF800000> : vector<16xf32>
    %10 = vector.multi_reduction <maximumf>, %5, %cst_7 [1] : vector<16x128xf32> to vector<16xf32>
    %11 = vector.shape_cast %10 : vector<16xf32> to vector<16x1xf32>
    %12 = vector.broadcast %11 : vector<16x1xf32> to vector<16x128xf32>
    %13 = arith.subf %5, %12 : vector<16x128xf32>
    %14 = math.exp %13 : vector<16x128xf32>
    %cst_8 = arith.constant 0.000000e+00 : f32
    %15 = vector.broadcast %cst_8 : f32 to vector<16x128xf32>
    %16 = arith.select %9, %15, %14 : vector<16x128xi1>, vector<16x128xf32>
    %cst_9 = arith.constant dense<0.000000e+00> : vector<16xf32>
    %17 = vector.multi_reduction <add>, %16, %cst_9 [1] : vector<16x128xf32> to vector<16xf32>
    %18 = vector.shape_cast %17 : vector<16xf32> to vector<16x1xf32>
    %cst_10 = arith.constant 1.000000e+00 : f32
    %19 = vector.broadcast %cst_10 : f32 to vector<16x1xf32>
    %20 = arith.divf %19, %18 : vector<16x1xf32>
    %21 = vector.broadcast %20 : vector<16x1xf32> to vector<16x128xf32>
    %22 = arith.mulf %16, %21 : vector<16x128xf32>
    %23 = arith.truncf %22 : vector<16x128xf32> to vector<16x128xbf16>
    %c0_11 = arith.constant 0 : index
    %c0_12 = arith.constant 0 : index
    %24 = vector.load %arg5[%c0_11, %c0_12] : memref<16x128xbf16, #tpu.memory_space<vmem>>, vector<16x128xbf16>
    tpu.vector_store %arg5[%c0_11, %c0_12], %23 {strides = array<i32>} : memref<16x128xbf16, #tpu.memory_space<vmem>>, vector<16x128xbf16>,
    return
  }
  func.func @transform_0(%arg0: i32) -> (i32, i32) {
    %c0_i32 = arith.constant 0 : i32
    %c0_i32_0 = arith.constant 0 : i32
    return %arg0, %c0_i32 : i32, i32
  }
  func.func @transform_1(%arg0: i32) -> (i32, i32) {
    %c0_i32 = arith.constant 0 : i32
    %c0_i32_0 = arith.constant 0 : i32
    %c0_i32_1 = arith.constant 0 : i32
    return %c0_i32, %c0_i32_0 : i32, i32
  }
  func.func @transform_2(%arg0: i32) -> (i32, i32) {
    %c0_i32 = arith.constant 0 : i32
    %c0_i32_0 = arith.constant 0 : i32
    %c0_i32_1 = arith.constant 0 : i32
    return %c0_i32, %c0_i32_0 : i32, i32
  }
  func.func @transform_3(%arg0: i32) -> (i32, i32) {
    %c0_i32 = arith.constant 0 : i32
    %c0_i32_0 = arith.constant 0 : i32
    return %arg0, %c0_i32 : i32, i32
  }
  func.func @transform_4(%arg0: i32) -> (i32, i32) {
    %c0_i32 = arith.constant 0 : i32
    %c0_i32_0 = arith.constant 0 : i32
    return %arg0, %c0_i32 : i32, i32
  }
}

</mosaic_0001>

<bundles_post_ra>
// kernel: tpu_custom_call.1
= control target key start
LH: loop header
LB: loop body
LE: loop exit
PB: predicated region body
PF: predicated region fallthrough
CT: control target
= control target key end

     0   :  { %9 = vsyncpa [#allocation3], 0  ;;  %s317_s0 = inlined_call_operand.hbm [shape: bf16[16,32], index: 0, kind: input, shape index: {}]   ;;  %s318_s1 = inlined_call_operand.vmem [shape: bf16[32,128], index: 1, kind: input, shape index: {}]   ;;  %s319_s2 = inlined_call_operand.vmem [shape: f32[1,128], index: 2, kind: input, shape index: {}]   ;;  %s320_s3 = inlined_call_operand.vmem [shape: s32[16,1], index: 3, kind: input, shape index: {}]   ;;  %s321_s4 = inlined_call_operand.hbm [shape: bf16[16,128], index: 4, kind: output, shape index: {}]  }
   0x1   :  { %10 = vsyncpa [#allocation4], 0  ;;  %s258_s15 = smov [#allocation2]  }
   0x2   :  { %s16_s16 = sshll.u32 %s258_s15, 4  ;;  %s17_s16 = int_to_ptr.vmem [resolvable:$true] %s16_s16 }
   0x3   :  { %s222_s17 = scalar_lea.vmem %s17_s16, 128  ;;  %p227_p1 = scmp.lt.s32.totalorder %s17_s16, %s17_s16 }
   0x4   :  { %p223_p0 = scmp.ne.s32.totalorder %s17_s16, %s222_s17  ;;  %p228_p2 = scmp.lt.s32.totalorder %s222_s17, %s222_s17 }
   0x6   :  { %p229_p3 = por %p228_p2, %p227_p1 }
   0x8   :  { %p230_p4 = pnand %p229_p3, %p223_p0 }
   0xa   :  { %233 = shalt.err (!%p230_p4)
}
   0xb   :  { %s259_s18 = smov 64   ;;  %s260_s19 = smov 4  }
   0xc   :  { %22 = dma.hbm_to_vmem [thread:$0]  %s317_s0, 128, %s17_s16, [#allocation3], %s259_s18, %s259_s18, %s260_s19  }
   0xd   :  { %254 = dma.done.wait [#allocation3], 128  }
   0xe   :  { %255 = vsyncadd [#allocation3], 4294967168  ;;  %v261_v0 = vmov 0.0   ;;  %vm262_vm0 = vmmov 0   ;;  %v203_v1 = vld [vmem:[%s318_s1 + $0x8] sm:$0xff]   ;;  %v204_v2 = vld [vmem:[%s318_s1] sm:$0xff]   ;;  %v108_v20 = vlaneseq }
   0xf   :  { %186 = vmatprep.subr.bf16.mxu0 %v261_v0  ;;  %190 = vmatprep.mubr.msk.bf16.mxu0 %vm262_vm0, %v261_v0  ;;  %v205_v3 = vld [vmem:[#allocation2] sm:$0xff]   ;;  %vm63_vm1 = vcmask 261120   ;;  %v263_v5 = vmov 0   ;;  %v111_v6 = vld [vmem:[%s320_s3 + $0x8] sm:$0xff] }
  0x10   :  { %187 = vmatpush3.bf16.msra.mxu0 %v203_v1  ;;  %v110_v4 = vld [vmem:[%s320_s3] sm:$0xff]  ;;  %201 = vset.pattern.permute.xlu1 %v263_v5  ;;  %v109_v21 = vand.u32 127, %v108_v20 }
  0x11   :  { %188 = vmatprep.subr.bf16.mxu0 %v261_v0  ;;  %202 = vset.pattern.permute.xlu0 %v263_v5  ;;  %v169_v7 = vld [vmem:[%s319_s2] ss:$0 sm:$0xff]  ;;  %s264_s2 = smov [#allocation5]  }
  0x12   :  { %113 = vperm.xlu1 %201, %v110_v4   ;;  %s157_s3 = sshll.u32 %s264_s2, 4  ;;  %s158_s3 = int_to_ptr.vmem [resolvable:$true] %s157_s3 }
  0x13   :  { %s234_s30 = scalar_lea.vmem %s158_s3, 128  ;;  %p239_p6 = scmp.lt.s32.totalorder %s158_s3, %s158_s3 }
  0x14   :  { %189 = vmatpush3.bf16.msra.mxu0 %v204_v2  ;;  %p235_p5 = scmp.ne.s32.totalorder %s158_s3, %s234_s30  ;;  %p240_p7 = scmp.lt.s32.totalorder %s234_s30, %s234_s30 }
  0x16   :  { %116 = vperm.xlu1 %201, %v111_v6   ;;  %p241_p8 = por %p240_p7, %p239_p6 }
  0x17   :  { %191 = vmatmul.mubr.msk.bf16.vlgmr.msra.gmra.mxu0 %vm63_vm1, %v205_v3 }
  0x18   :  { %p242_p9 = pnand %p241_p8, %p235_p5 }
  0x8d   :  { %v114_v22 = vpop.permute.xlu1 %113 }
  0x8e   :  { %vm118_vm2 = vcmp.ge.s32.totalorder %v109_v21, %v114_v22 }
  0x91   :  { %v117_v24 = vpop.permute.xlu1 %116 }
  0x92   :  { %vm119_vm3 = vcmp.ge.s32.totalorder %v109_v21, %v117_v24 }
  0xd7   :  { %v101_v8 = vpop.f32.mrf.mxu0 }
  0xd8   :  { %v102_v9 = vadd.f32 %v169_v7, %v101_v8 }
  0xd9   :  { %v192_v10 = vpop.f32.mrf.mxu0 }
  0xda   :  { %120 = vmax.xlane.f32.xlu0 %v102_v9 }
  0xdb   :  { %v104_v11 = vpop.f32.mrf.mxu0 }
  0xdc   :  { %v105_v12 = vadd.f32 %v169_v7, %v104_v11 }
  0xdd   :  { %v193_v13 = vpop.f32.mrf.mxu0 }
  0xde   :  { %122 = vmax.xlane.f32.xlu0 %v105_v12 }
 0x163   :  { %v121_v14 = vpop.xlane.xlu0 %120 }
 0x164   :  { %v124_v15 = vsub.f32 %v102_v9, %v121_v14 }
 0x166   :  { %v126_v16 = vmul.f32 1.442695, %v124_v15 }
 0x167   :  { %v123_v17 = vpop.xlane.xlu0 %122 }
 0x168   :  { %206 = vpow2.f32 %v126_v16  ;;  %v125_v18 = vsub.f32 %v105_v12, %v123_v17 }
 0x16a   :  { %v128_v19 = vmul.f32 1.442695, %v125_v18 }
 0x16c   :  { %208 = vpow2.f32 %v128_v19 }
 0x175   :  { %v207_v23 = vpop.eup %206 }
 0x176   :  { %v130_v25 = vsel %vm118_vm2, 0.0, %v207_v23 }
 0x177   :  { %132 = vadd.xlane.f32.xlu0 %v130_v25 }
 0x179   :  { %v209_v26 = vpop.eup %208 }
 0x17a   :  { %v131_v27 = vsel %vm119_vm3, 0.0, %v209_v26 }
 0x17b   :  { %134 = vadd.xlane.f32.xlu1 %v131_v27 }
 0x200   :  { %v133_v28 = vpop.xlane.xlu0 %132 }
 0x201   :  { %210 = vrcp.f32 %v133_v28 }
 0x204   :  { %v135_v29 = vpop.xlane.xlu1 %134 }
 0x205   :  { %212 = vrcp.f32 %v135_v29 }
 0x20e   :  { %v211_v30 = vpop.eup %210 }
 0x20f   :  { %v140_v32 = vmul.f32 %v211_v30, %v130_v25 }
 0x212   :  { %v213_v31 = vpop.eup %212 }
 0x213   :  { %v141_v33 = vmul.f32 %v213_v31, %v131_v27 }
 0x215   :  { %v181_v34 = vpack.c.bf16 %v141_v33, %v140_v32 }
 0x217   :  { %182 = vst [vmem:[#allocation5] sm:$0xff] %v181_v34  }
 0x218   :  { %245 = shalt.err (!%p242_p9)
}
 0x219   :  { %163 = dma.vmem_to_hbm [thread:$0]  %s158_s3, 128, %s321_s4, [#allocation4], %s259_s18, %s259_s18, %s260_s19  }
 0x21a   :  { %256 = dma.done.wait [#allocation4], 128  }
 0x21b   :  { %257 = vsyncadd [#allocation4], 4294967168 }
 0x21c   :  { %167 = vsyncpa [#allocation3], 1 }
 0x21d   :  { %168 = vsyncpa [#allocation4], 1 }

</bundles_post_ra>
